<compile_context>
chip_gen: v7x
topology: tpu7x:2x2x1
jax: 0.10.0
libtpu: 0.0.40
codegen_flags: <defaults>
</compile_context>

<pallas_src>
import jax
import jax.numpy as jnp
from jax import lax
from jax.experimental import pallas as pl
from jax.experimental.pallas import tpu as pltpu


def _complex_param_kernel(pr_ref, pi_ref, or_ref, oi_ref):
    # Single streaming pass over each (TM, C) tile: read the real / imag
    # parameter tiles once, cast to f32 on the VPU (free under the DMA-bound
    # copy), store lane-dense f32 tiles.
    or_ref[...] = pr_ref[...].astype(or_ref.dtype)
    oi_ref[...] = pi_ref[...].astype(oi_ref.dtype)


def _choose_slab(m, n):
    """Flatten (m, n) to a lane-dense (r, c) slab with c a multiple of 128.
    Returns None if the element count is not a multiple of 128 (tiny/awkward
    shapes fall back to the XLA fast path)."""
    total = m * n
    if total % 128 != 0:
        return None
    c = 128
    while c * 2 <= 1024 and total % (c * 2) == 0:
        c *= 2
    return total // c, c


def _pick_row_tile(r, c, in_itemsize, budget_bytes=12 * 1024 * 1024):
    """Largest row tile (descending powers of two of the native sublane tile)
    that divides r and keeps the double-buffered footprint
    (2 copies x (2 inputs + 2 f32 outputs)) under `budget_bytes` -- sized for
    the smallest default scoped-VMEM budget (v5e: 16 MiB), so the same code is
    safe on v5e / v6e / v7x without touching vmem_limit_bytes."""
    per_row_bytes = 4 * c * (in_itemsize + 4)
    max_rows = max(1, budget_bytes // per_row_bytes)
    if r <= max_rows:
        return r                    # whole slab: full-dim block is always legal
    sub = 16 if in_itemsize < 4 else 8   # bf16 native sublane tile is 16
    best = 0
    cand = sub
    while cand <= max_rows:
        if r % cand == 0:
            best = cand
        cand *= 2
    return best if best > 0 else None    # None -> no legal tiling, use XLA path


def complex_parameter_forward(p_r, p_i, *, use_kernel=None, row_tile=None):
    """Pallas-backed equivalent of ComplexParameter.forward():
    returns p_r + 1j * p_i as complex64 of shape (in_features, out_features).

    use_kernel: None -> auto (XLA fast path for small params), True/False force.
    row_tile:   optional row-tile override (must divide the flattened slab).
    """
    assert p_r.shape == p_i.shape and p_r.ndim == 2
    assert p_r.dtype == p_i.dtype
    m, n = p_r.shape

    def fast_path(pr, pi):
        # Single fused XLA pass (2 reads + 1 write): optimal for the tiny
        # parameters typical of PIHNN layers; no kernel-launch overhead.
        return lax.complex(pr.astype(jnp.float32), pi.astype(jnp.float32))

    small = (m * n * 8) < (512 * 1024)       # < 512 KiB of complex64 output
    if use_kernel is False or (use_kernel is None and small):
        return fast_path(p_r, p_i)

    slab = _choose_slab(m, n)
    if slab is None:
        return fast_path(p_r, p_i)
    r, c = slab

    pr, pi = p_r, p_i
    if pr.dtype not in (jnp.float32, jnp.bfloat16):
        # f64 / f16 / int params: normalize wrapper-side so Mosaic only ever
        # sees f32 / bf16 tiles (output always matches complex64 semantics).
        pr, pi = pr.astype(jnp.float32), pi.astype(jnp.float32)
    itemsize = jnp.dtype(pr.dtype).itemsize

    tm = row_tile if row_tile is not None else _pick_row_tile(r, c, itemsize)
    if tm is None:
        return fast_path(p_r, p_i)
    assert r % tm == 0, "row_tile must divide the flattened slab rows"

    # Contiguous reshape to the lane-dense slab (metadata-only for row-major).
    pr2, pi2 = pr.reshape(r, c), pi.reshape(r, c)

    blk_in = pl.BlockSpec((tm, c), lambda i: (i, 0))
    blk_out = pl.BlockSpec((tm, c), lambda i: (i, 0))
    out_r, out_i = pl.pallas_call(
        _complex_param_kernel,
        out_shape=(jax.ShapeDtypeStruct((r, c), jnp.float32),
                   jax.ShapeDtypeStruct((r, c), jnp.float32)),
        grid_spec=pltpu.PrefetchScalarGridSpec(
            num_scalar_prefetch=0,
            grid=(r // tm,),
            in_specs=[blk_in, blk_in],
            out_specs=[blk_out, blk_out],
        ),
        # Row axis is embarrassingly parallel -> v7x's two TCs split the DMA.
        compiler_params=pltpu.CompilerParams(
            dimension_semantics=("parallel",),
        ),
    )(pr2, pi2)

    # TODO(synk): Mosaic/Pallas has no complex dtype; the (re, im) -> complex64
    # compose stays wrapper-side as lax.complex on the lane-dense f32 outputs.
    return lax.complex(out_r, out_i).reshape(m, n)


def init_complex_parameter(key, minvalue=-1 - 1j, maxvalue=1 + 1j,
                           in_features=1, out_features=1):
    """Deterministic replica of ComplexParameter.__init__ parameter init."""
    k_r, k_i = jax.random.split(key)
    p_r = (maxvalue.real - minvalue.real) * jax.random.uniform(
        k_r, (in_features, out_features), dtype=jnp.float32) + minvalue.real
    p_i = (maxvalue.imag - minvalue.imag) * jax.random.uniform(
        k_i, (in_features, out_features), dtype=jnp.float32) + minvalue.imag
    return p_r, p_i


if __name__ == "__main__":
    key = jax.random.PRNGKey(0)
    k1, k2, k3 = jax.random.split(key, 3)

    # Case 1: typical tiny PIHNN parameter -> small-size fast path (no Pallas).
    p_r, p_i = init_complex_parameter(
        k1, minvalue=-1 - 1j, maxvalue=1 + 1j, in_features=8, out_features=16)
    ref1 = lax.complex(p_r, p_i)
    out1 = jax.block_until_ready(complex_parameter_forward(p_r, p_i))
    assert out1.shape == (8, 16) and out1.dtype == jnp.complex64
    assert jnp.allclose(out1, ref1)

    # Case 2: force the Pallas kernel path on a small f32 parameter and
    # exercise a multi-step "parallel" row grid (slab (32, 1024), grid=(4,)).
    p_r2, p_i2 = init_complex_parameter(
        k2, minvalue=-2 - 0.5j, maxvalue=3 + 1.5j,
        in_features=128, out_features=256)
    ref2 = lax.complex(p_r2, p_i2)
    out2 = jax.block_until_ready(
        complex_parameter_forward(p_r2, p_i2, use_kernel=True, row_tile=8))
    assert out2.shape == (128, 256) and out2.dtype == jnp.complex64
    assert jnp.allclose(out2, ref2)

    # Case 3: bf16 parameters exercise the fused in-kernel f32 cast
    # (slab (32, 1024), bf16 sublane-friendly row tile 16 -> grid=(2,)).
    p_r3f, p_i3f = init_complex_parameter(
        k3, minvalue=-1 - 1j, maxvalue=1 + 1j,
        in_features=256, out_features=128)
    p_r3, p_i3 = p_r3f.astype(jnp.bfloat16), p_i3f.astype(jnp.bfloat16)
    ref3 = lax.complex(p_r3.astype(jnp.float32), p_i3.astype(jnp.float32))
    out3 = jax.block_until_ready(
        complex_parameter_forward(p_r3, p_i3, use_kernel=True, row_tile=16))
    assert out3.shape == (256, 128) and out3.dtype == jnp.complex64
    assert jnp.allclose(out3, ref3)

    print("KERNEL_OK")
</pallas_src>

<mosaic_0001>
module attributes {stable_mosaic.version = 11 : i64} {
  func.func @_complex_param_kernel(%arg0: i32, %arg1: memref<8x1024xf32, #tpu.memory_space<vmem>>, %arg2: memref<8x1024xf32, #tpu.memory_space<vmem>>, %arg3: memref<8x1024xf32, #tpu.memory_space<vmem>>, %arg4: memref<8x1024xf32, #tpu.memory_space<vmem>>) attributes {dimension_semantics = [#tpu.dimension_semantics<parallel>], iteration_bounds = array<i64: 4>, scalar_prefetch = 0 : i64, scratch_operands = 0 : i64, tpu.core_type = #tpu.core_type<tc>, window_params = [{transform_indices = @transform_0, window_bounds = array<i64: 8, 1024>}, {transform_indices = @transform_1, window_bounds = array<i64: 8, 1024>}, {transform_indices = @transform_2, window_bounds = array<i64: 8, 1024>}, {transform_indices = @transform_3, window_bounds = array<i64: 8, 1024>}]} {
    %c0 = arith.constant 0 : index
    %c0_0 = arith.constant 0 : index
    %0 = vector.load %arg1[%c0, %c0_0] : memref<8x1024xf32, #tpu.memory_space<vmem>>, vector<8x1024xf32>
    %c0_1 = arith.constant 0 : index
    %c0_2 = arith.constant 0 : index
    %1 = vector.load %arg3[%c0_1, %c0_2] : memref<8x1024xf32, #tpu.memory_space<vmem>>, vector<8x1024xf32>
    tpu.vector_store %arg3[%c0_1, %c0_2], %0 {strides = array<i32>} : memref<8x1024xf32, #tpu.memory_space<vmem>>, vector<8x1024xf32>,
    %c0_3 = arith.constant 0 : index
    %c0_4 = arith.constant 0 : index
    %2 = vector.load %arg2[%c0_3, %c0_4] : memref<8x1024xf32, #tpu.memory_space<vmem>>, vector<8x1024xf32>
    %c0_5 = arith.constant 0 : index
    %c0_6 = arith.constant 0 : index
    %3 = vector.load %arg4[%c0_5, %c0_6] : memref<8x1024xf32, #tpu.memory_space<vmem>>, vector<8x1024xf32>
    tpu.vector_store %arg4[%c0_5, %c0_6], %2 {strides = array<i32>} : memref<8x1024xf32, #tpu.memory_space<vmem>>, vector<8x1024xf32>,
    return
  }
  func.func @transform_0(%arg0: i32) -> (i32, i32) {
    %c0_i32 = arith.constant 0 : i32
    %c0_i32_0 = arith.constant 0 : i32
    return %arg0, %c0_i32 : i32, i32
  }
  func.func @transform_1(%arg0: i32) -> (i32, i32) {
    %c0_i32 = arith.constant 0 : i32
    %c0_i32_0 = arith.constant 0 : i32
    return %arg0, %c0_i32 : i32, i32
  }
  func.func @transform_2(%arg0: i32) -> (i32, i32) {
    %c0_i32 = arith.constant 0 : i32
    %c0_i32_0 = arith.constant 0 : i32
    return %arg0, %c0_i32 : i32, i32
  }
  func.func @transform_3(%arg0: i32) -> (i32, i32) {
    %c0_i32 = arith.constant 0 : i32
    %c0_i32_0 = arith.constant 0 : i32
    return %arg0, %c0_i32 : i32, i32
  }
}

</mosaic_0001>

<bundles_post_ra>
// kernel: tpu_custom_call.1
= control target key start
LH: loop header
LB: loop body
LE: loop exit
PB: predicated region body
PF: predicated region fallthrough
CT: control target
= control target key end

     0   :  { %9 = vsyncpa [#allocation3], 0  ;;  %s954_s0 = inlined_call_operand.hbm [shape: f32[32,1024], index: 0, kind: input, shape index: {}]   ;;  %s955_s1 = inlined_call_operand.hbm [shape: f32[32,1024], index: 1, kind: input, shape index: {}]   ;;  %s956_s2 = inlined_call_operand.hbm [shape: f32[32,1024], index: 2, kind: output, shape index: {0}]   ;;  %s957_s3 = inlined_call_operand.hbm [shape: f32[32,1024], index: 3, kind: output, shape index: {1}]  }
   0x1   :  { %11 = vsyncpa [#allocation3 + $0x1], 0 }
   0x2   :  { %12 = vsyncpa [#allocation6], 0 }
   0x3   :  { %14 = vsyncpa [#allocation6 + $0x1], 0 }
   0x4   :  { %15 = vsyncpa [#allocation4], 0 }
   0x5   :  { %17 = vsyncpa [#allocation4 + $0x1], 0 }
   0x6   :  { %18 = vsyncpa [#allocation9], 0 }
   0x7   :  { %20 = vsyncpa [#allocation9 + $0x1], 0  ;;  %s697_s12 = smov 0   ;;  %s699_s13 = smov 0  }
   0x8   :  { %s701_s14 = smov 0   ;;  %s703_s15 = smov 0  }
   0x9 LB: > { %s718_s16 = sadd.s32 4294967295, %s671_s15   ;;  %s427_s17 = sadd.s32 4294967294, %s671_s15   ;;  %s671_s15 = sphi %s703_s15, %s975_s15   ;;  %s667_s14 = sphi %s701_s14, %s974_s14   ;;  %s663_s13 = sphi %s699_s13, %s973_s13   ;;  %s659_s12 = sphi %s697_s12, %s972_s12  }
   0xa   : > { %s722_s18 = sadd.s32 1, %s671_s15   ;;  %s33_s19 = sadd.s32 1, %s667_s14 }
   0xb   : > { %s30_s20 = ssub.s32 %s671_s15, %s722_s18  ;;  %p40_p0 = scmp.ne.s32.totalorder %s667_s14, %s663_s13 }
   0xc   : > { %p31_p1 = scmp.eq.s32.totalorder %s30_s20, 0  ;;  %p41_p2 = scmp.eq.s32.totalorder %s671_s15, 0 }
   0xd   : > { %p46_p3 = scmp.ne.s32.totalorder %s663_s13, %s659_s12  ;;  %p47_p4 = scmp.eq.s32.totalorder %s718_s16, 0 }
   0xe   : > { %s734_s21 = scalar_select %p31_p1, %s667_s14, %s33_s19  }
   0xf   : > { %p736_p5 = por %p41_p2, %p40_p0  ;;  %p740_p6 = por %p47_p4, %p46_p3 }
  0x10   : > { %p96_p7 = scmp.eq.s32.totalorder %s718_s16, 3  ;;  %p102_p8 = scmp.eq.s32.totalorder %s427_s17, 3 }
  0x11   : > { %s961_s23 = scalar_select %p740_p6, 1, 0 }
  0x12   : > { %p475_p9 = scmp.lt.s32.totalorder %s671_s15, 4  ;;  %p746_p10 = por %p96_p7, %p40_p0 }
  0x13   : > { %p750_p11 = por %p102_p8, %p46_p3  ;;  %s755_s26 = sand.u32 1, %s667_s14  }
  0x14   : > { %s962_s24 = scalar_select %p746_p10, 1, 0 }
  0x15   : > { %s963_s25 = scalar_select %p750_p11, 1, 0 }
  0x16   : > { %s449_s27 = sshll.u32 %s671_s15, 10  ;;  %s430_s28 = sshll.u32 %s755_s26, 6 }
  0x17   : > { %s764_s4 = scalar_lea.hbm %s954_s0, %s449_s27  ;;  %s152_s5 = scalar_lea.vmem [#allocation2], %s430_s28 }
  0x18   : > { %s160_s6 = sshll.u32 %s152_s5, 4  ;;  %p770_p12 = pnand %p475_p9, %p736_p5  ;;  %s774_s6 = int_to_ptr.vmem [resolvable:$true] %s160_s6 }
  0x19   : > { %s149_s8 = scalar_lea.sflag [#allocation3], %s755_s26  ;;  %s509_s9 = scalar_lea.hbm %s764_s4, 1024 }
  0x1a   : > { %p510_p1 = scmp.ne.s32.totalorder %s764_s4, %s509_s9  ;;  %p511_p2 = pneg %p770_p12 }
  0x1b   : > { %s514_s17 = scalar_lea.hbm %s954_s0, 4096  ;;  %p515_p5 = scmp.lt.u32.totalorder %s764_s4, %s954_s0 }
  0x1c   : > { %p512_p3 = pnand %p511_p2, %p510_p1  ;;  %p516_p7 = scmp.lt.u32.totalorder %s514_s17, %s509_s9 }
  0x1d   : > { %p518_p9 = scmp.lt.u32.totalorder %s509_s9, %s764_s4 }
  0x1e   : > { %p513_p4 = pneg %p512_p3  ;;  %p517_p8 = por %p516_p7, %p515_p5 }
  0x20   : > { %p519_p13 = por %p518_p9, %p517_p8 }
  0x22   : > { %p520_p0 = pnand %p519_p13, %p513_p4 }
  0x24   : > { %523 = shalt.err (!%p520_p0)
}
  0x25   : > { %s524_s22 = scalar_lea.vmem %s774_s6, 1024  ;;  %s673_s29 = smov [#allocation2]  }
  0x26   : > { %p525_p1 = scmp.ne.s32.totalorder %s774_s6, %s524_s22  ;;  %s529_s30 = sshll.u32 %s673_s29, 4  ;;  %s530_s30 = int_to_ptr.vmem [resolvable:$false] %s529_s30 }
  0x27   : > { %s531_s5 = scalar_lea.vmem %s530_s30, 2048  ;;  %p532_p10 = scmp.lt.s32.totalorder %s774_s6, %s530_s30 }
  0x28   : > { %p527_p3 = pnand %p525_p1, %p511_p2  ;;  %p533_p5 = scmp.lt.s32.totalorder %s531_s5, %s524_s22 }
  0x2a   : > { %p528_p11 = pneg %p527_p3  ;;  %p534_p7 = por %p533_p5, %p532_p10 }
  0x2c   : > { %p535_p8 = pnand %p534_p7, %p528_p11 }
  0x2e   : > { %538 = shalt.err (!%p535_p8)
}
  0x2f   : > { %464 = dma.hbm_to_vmem [thread:$0]  (!%p770_p12), %s764_s4, 1024, %s774_s6, %s149_s8  }
  0x30   : > { %p965_p13 = scmp.lt.s32.totalorder %s671_s15, 5  ;;  %p966_p0 = scmp.ge.s32.totalorder %s671_s15, 1 }
  0x31   : > { %s817_s17 = scalar_lea.hbm %s955_s1, %s449_s27  ;;  %s171_s19 = scalar_lea.vmem [#allocation5], %s430_s28 }
  0x32   : > { %p808_p4 = pnand %p966_p0, %p965_p13  ;;  %s179_s20 = sshll.u32 %s171_s19, 4  ;;  %s180_s20 = int_to_ptr.vmem [resolvable:$true] %s179_s20 }
  0x33   : > { %s168_s4 = scalar_lea.sflag [#allocation6], %s755_s26  ;;  %s539_s6 = scalar_lea.hbm %s817_s17, 1024 }
  0x34   : > { %s967_s9 = scalar_select %p808_p4, 1, 0 }
  0x35   : > { %p540_p10 = scmp.ne.s32.totalorder %s817_s17, %s539_s6  ;;  %s544_s27 = scalar_lea.hbm %s955_s1, 4096 }
  0x36   : > { %p545_p1 = scmp.lt.u32.totalorder %s817_s17, %s955_s1  ;;  %p546_p3 = scmp.lt.u32.totalorder %s544_s27, %s539_s6 }
  0x37   : > { %p542_p11 = pnand %p540_p10, %p511_p2  ;;  %p548_p7 = scmp.lt.u32.totalorder %s539_s6, %s817_s17 }
  0x38   : > { %p547_p5 = por %p546_p3, %p545_p1 }
  0x39   : > { %p543_p9 = pneg %p542_p11 }
  0x3a   : > { %p549_p8 = por %p548_p7, %p547_p5 }
  0x3c   : > { %p550_p13 = pnand %p549_p8, %p543_p9 }
  0x3e   : > { %553 = shalt.err (!%p550_p13)
}
  0x3f   : > { %s554_s26 = scalar_lea.vmem %s180_s20, 1024  ;;  %s674_s28 = smov [#allocation5]  }
  0x40   : > { %p555_p0 = scmp.ne.s32.totalorder %s180_s20, %s554_s26  ;;  %s559_s5 = sshll.u32 %s674_s28, 4  ;;  %s560_s5 = int_to_ptr.vmem [resolvable:$false] %s559_s5 }
  0x41   : > { %s561_s10 = scalar_lea.vmem %s560_s5, 2048  ;;  %p562_p6 = scmp.lt.s32.totalorder %s180_s20, %s560_s5 }
  0x42   : > { %p557_p10 = pnand %p555_p0, %p511_p2  ;;  %p563_p4 = scmp.lt.s32.totalorder %s561_s10, %s554_s26 }
  0x44   : > { %p558_p11 = pneg %p557_p10  ;;  %p564_p1 = por %p563_p4, %p562_p6 }
  0x46   : > { %p565_p3 = pnand %p564_p1, %p558_p11 }
  0x48   : > { %568 = shalt.err (!%p565_p3)
}
  0x49   : > { %467 = dma.hbm_to_vmem [thread:$0]  (!%p770_p12), %s817_s17, 1024, %s180_s20, %s168_s4  }
  0x4a   : > { %p968_p9 = scmp.ne.s32.totalorder %s967_s9, 0 }
  0x4b   : > { %s844_s11 = sand.u32 (!%p968_p9), 1, %s663_s13   ;;  %p969_p2 = scmp.ne.s32.totalorder (!%p968_p9), %s961_s23, 0 }
  0x4c   : > { %188 = sbr.rel (%p968_p9) target bundleno = 136 (0x88), region = 28  ;;  %s437_s19 = sshll.u32 (!%p968_p9), %s844_s11, 6 }
  0x4d   : > { %s191_s6 = scalar_lea.sflag (!%p968_p9), [#allocation3], %s844_s11  ;;  %s194_s8 = scalar_lea.vmem (!%p968_p9), [#allocation2], %s437_s19 }
  0x53   : > { %642 = dma.done.wait (%p969_p2), %s191_s6, 1024  }
  0x54   : > { %644 = vsyncadd (%p969_p2), %s191_s6, 4294966272  ;;  %s200_s7 = scalar_lea.sflag [#allocation6], %s844_s11  ;;  %s853_s17 = scalar_lea.vmem [#allocation5], %s437_s19 }
  0x55   : > { %646 = dma.done.wait (%p969_p2), %s200_s7, 1024  }
  0x56   : > { %648 = vsyncadd (%p969_p2), %s200_s7, 4294966272  ;;  %s451_s9 = sshll.u32 %s718_s16, 10  ;;  %s228_s20 = scalar_lea.vmem [#allocation7], %s437_s19  ;;  %v236_v0 = vld [vmem:[%s194_s8] sm:$0xff]  ;;  %v237_v1 = vld [vmem:[%s194_s8 + $0x8] sm:$0xff] }
  0x57   : > { %s288_s4 = sshll.u32 %s228_s20, 4  ;;  %v238_v2 = vld [vmem:[%s194_s8 + $0x10] sm:$0xff]  ;;  %s860_s22 = scalar_lea.vmem [#allocation8], %s437_s19  ;;  %244 = vst [vmem:[%s228_s20] sm:$0xff] %v236_v0  ;;  %245 = vst [vmem:[%s228_s20 + $0x8] sm:$0xff] %v237_v1  ;;  %v239_v3 = vld [vmem:[%s194_s8 + $0x18] sm:$0xff]  ;;  %s868_s4 = int_to_ptr.vmem [resolvable:$true] %s288_s4 }
  0x58   : > { %s302_s27 = sshll.u32 %s860_s22, 4  ;;  %246 = vst [vmem:[%s228_s20 + $0x10] sm:$0xff] %v238_v2  ;;  %v240_v4 = vld [vmem:[%s194_s8 + $0x20] sm:$0xff]  ;;  %v241_v5 = vld [vmem:[%s194_s8 + $0x28] sm:$0xff]  ;;  %s866_s29 = scalar_lea.hbm %s956_s2, %s451_s9  ;;  %247 = vst [vmem:[%s228_s20 + $0x18] sm:$0xff] %v239_v3  ;;  %s880_s27 = int_to_ptr.vmem [resolvable:$true] %s302_s27 }
  0x59   : > { %248 = vst [vmem:[%s228_s20 + $0x20] sm:$0xff] %v240_v4  ;;  %249 = vst [vmem:[%s228_s20 + $0x28] sm:$0xff] %v241_v5  ;;  %v242_v6 = vld [vmem:[%s194_s8 + $0x30] sm:$0xff]  ;;  %v243_v7 = vld [vmem:[%s194_s8 + $0x38] sm:$0xff]  ;;  %s878_s28 = scalar_lea.hbm %s957_s3, %s451_s9  ;;  %s269_s5 = scalar_lea.sflag [#allocation4], %s844_s11 }
  0x5a   : > { %v252_v8 = vld [vmem:[%s853_s17] sm:$0xff]  ;;  %250 = vst [vmem:[%s228_s20 + $0x30] sm:$0xff] %v242_v6  ;;  %251 = vst [vmem:[%s228_s20 + $0x38] sm:$0xff] %v243_v7  ;;  %v253_v9 = vld [vmem:[%s853_s17 + $0x8] sm:$0xff]  ;;  %s569_s10 = scalar_lea.vmem %s868_s4, 1024  ;;  %p970_p12 = scmp.ne.s32.totalorder %s962_s24, 0 }
  0x5b   : > { %260 = vst [vmem:[%s860_s22] sm:$0xff] %v252_v8  ;;  %v254_v10 = vld [vmem:[%s853_s17 + $0x10] sm:$0xff]  ;;  %v255_v11 = vld [vmem:[%s853_s17 + $0x18] sm:$0xff]  ;;  %261 = vst [vmem:[%s860_s22 + $0x8] sm:$0xff] %v253_v9  ;;  %p570_p6 = scmp.ne.s32.totalorder %s868_s4, %s569_s10  ;;  %s675_s19 = smov [#allocation7]  }
  0x5c   : > { %262 = vst [vmem:[%s860_s22 + $0x10] sm:$0xff] %v254_v10  ;;  %263 = vst [vmem:[%s860_s22 + $0x18] sm:$0xff] %v255_v11  ;;  %v256_v12 = vld [vmem:[%s853_s17 + $0x20] sm:$0xff]  ;;  %v257_v13 = vld [vmem:[%s853_s17 + $0x28] sm:$0xff]  ;;  %s573_s6 = sshll.u32 %s675_s19, 4  ;;  %s574_s6 = int_to_ptr.vmem [resolvable:$false] %s573_s6 }
  0x5d   : > { %v258_v14 = vld [vmem:[%s853_s17 + $0x30] sm:$0xff]  ;;  %p571_p4 = pnand %p570_p6, %p970_p12  ;;  %s575_s8 = scalar_lea.vmem %s574_s6, 2048 }
  0x5e   : > { %p576_p7 = scmp.lt.s32.totalorder %s868_s4, %s574_s6  ;;  %p577_p8 = scmp.lt.s32.totalorder %s575_s8, %s569_s10 }
  0x5f   : > { %p572_p5 = pneg %p571_p4 }
  0x60   : > { %p578_p13 = por %p577_p8, %p576_p7 }
  0x62   : > { %p579_p0 = pnand %p578_p13, %p572_p5 }
  0x64   : > { %582 = shalt.err (!%p579_p0)
}
  0x65   : > { %s583_s7 = scalar_lea.hbm %s866_s29, 1024  ;;  %s587_s16 = scalar_lea.hbm %s956_s2, 4096 }
  0x66   : > { %p584_p10 = scmp.ne.s32.totalorder %s866_s29, %s583_s7  ;;  %p588_p3 = scmp.lt.u32.totalorder %s866_s29, %s956_s2 }
  0x67   : > { %p589_p9 = scmp.lt.u32.totalorder %s587_s16, %s583_s7  ;;  %p591_p6 = scmp.lt.u32.totalorder %s583_s7, %s866_s29 }
  0x68   : > { %p585_p11 = pnand %p584_p10, %p970_p12 }
  0x69   : > { %p590_p2 = por %p589_p9, %p588_p3 }
  0x6a   : > { %p586_p1 = pneg %p585_p11 }
  0x6b   : > { %p592_p4 = por %p591_p6, %p590_p2 }
  0x6d   : > { %p593_p5 = pnand %p592_p4, %p586_p1 }
  0x6f   : > { %596 = shalt.err (!%p593_p5)
}
  0x70   : > { %457 = dma.vmem_to_hbm [thread:$0]  (%p970_p12), %s868_s4, 1024, %s866_s29, %s269_s5   ;;  %264 = vst [vmem:[%s860_s22 + $0x20] sm:$0xff] %v256_v12  ;;  %265 = vst [vmem:[%s860_s22 + $0x28] sm:$0xff] %v257_v13  ;;  %v259_v15 = vld [vmem:[%s853_s17 + $0x38] sm:$0xff] }
  0x71   : > { %266 = vst [vmem:[%s860_s22 + $0x30] sm:$0xff] %v258_v14  ;;  %267 = vst [vmem:[%s860_s22 + $0x38] sm:$0xff] %v259_v15  ;;  %s274_s26 = scalar_lea.sflag [#allocation9], %s844_s11  ;;  %s597_s10 = scalar_lea.vmem %s880_s27, 1024 }
  0x72   : > { %p598_p7 = scmp.ne.s32.totalorder %s880_s27, %s597_s10  ;;  %s676_s19 = smov [#allocation8]  }
  0x73   : > { %s601_s6 = sshll.u32 %s676_s19, 4  ;;  %s602_s6 = int_to_ptr.vmem [resolvable:$false] %s601_s6 }
  0x74   : > { %p599_p8 = pnand %p598_p7, %p970_p12  ;;  %s603_s8 = scalar_lea.vmem %s602_s6, 2048 }
  0x75   : > { %p604_p0 = scmp.lt.s32.totalorder %s880_s27, %s602_s6  ;;  %p605_p10 = scmp.lt.s32.totalorder %s603_s8, %s597_s10 }
  0x76   : > { %p600_p13 = pneg %p599_p8 }
  0x77   : > { %p606_p11 = por %p605_p10, %p604_p0 }
  0x79   : > { %p607_p1 = pnand %p606_p11, %p600_p13 }
  0x7b   : > { %610 = shalt.err (!%p607_p1)
}
  0x7c   : > { %s611_s11 = scalar_lea.hbm %s878_s28, 1024  ;;  %s615_s22 = scalar_lea.hbm %s957_s3, 4096 }
  0x7d   : > { %p612_p3 = scmp.ne.s32.totalorder %s878_s28, %s611_s11  ;;  %p616_p6 = scmp.lt.u32.totalorder %s878_s28, %s957_s3 }
  0x7e   : > { %p617_p4 = scmp.lt.u32.totalorder %s615_s22, %s611_s11  ;;  %p619_p7 = scmp.lt.u32.totalorder %s611_s11, %s878_s28 }
  0x7f   : > { %p613_p9 = pnand %p612_p3, %p970_p12 }
  0x80   : > { %p618_p5 = por %p617_p4, %p616_p6 }
  0x81   : > { %p614_p2 = pneg %p613_p9 }
  0x82   : > { %p620_p8 = por %p619_p7, %p618_p5 }
  0x84   : > { %p621_p13 = pnand %p620_p8, %p614_p2 }
  0x86   : > { %624 = shalt.err (!%p621_p13)
}
  0x87   : > { %458 = dma.vmem_to_hbm [thread:$0]  (%p970_p12), %s880_s27, 1024, %s878_s28, %s274_s26  }
  0x88 PF: > { %p476_p0 = scmp.ge.s32.totalorder %s671_s15, 2  ;;  %s314_s7 = sand.u32 1, %s659_s12  }
  0x89   : > { %p971_p10 = scmp.ne.s32.totalorder %s963_s25, 0  ;;  %s315_s9 = scalar_lea.sflag [#allocation4], %s314_s7 }
  0x8b   : > { %p469_p11 = pnand %p476_p0, %p971_p10 }
  0x8d   : > { %650 = dma.done.wait (!%p469_p11), %s315_s9, 1024  }
  0x8e   : > { %652 = vsyncadd (!%p469_p11), %s315_s9, 4294966272  ;;  %s324_s20 = scalar_lea.sflag [#allocation9], %s314_s7 }
  0x8f   : > { %654 = dma.done.wait (!%p469_p11), %s324_s20, 1024  }
  0x90   : > { %656 = vsyncadd (!%p469_p11), %s324_s20, 4294966272  ;;  %p23_p12 = scmp.ge.s32.totalorder %s722_s18, 6   ;;  %s972_s12 = smov %s663_s13 }
  0x91   : > { %s973_s13 = smov %s667_s14  ;;  %s974_s14 = smov %s734_s21 }
  0x92   : > { %s975_s15 = smov %s722_s18  ;;  %25 = sbr.rel (!%p23_p12) target bundleno = 9 (0x9), region = 103 }
  0x99   :  { %329 = vsyncpa [#allocation3], 1 }
  0x9a   :  { %331 = vsyncpa [#allocation3 + $0x1], 1 }
  0x9b   :  { %332 = vsyncpa [#allocation6], 1 }
  0x9c   :  { %334 = vsyncpa [#allocation6 + $0x1], 1 }
  0x9d   :  { %335 = vsyncpa [#allocation4], 1 }
  0x9e   :  { %337 = vsyncpa [#allocation4 + $0x1], 1 }
  0x9f   :  { %338 = vsyncpa [#allocation9], 1 }
  0xa0   :  { %340 = vsyncpa [#allocation9 + $0x1], 1 }

</bundles_post_ra>
